<compile_context>
chip_gen: v5e
topology: v5e:2x2
jax: 0.10.0
libtpu: 0.0.40
codegen_flags: <defaults>
</compile_context>

<pallas_src>
import math
import jax
import jax.numpy as jnp
from jax.experimental import pallas as pl
from jax.experimental.pallas import tpu as pltpu


def _round_up(x, m):
    return ((x + m - 1) // m) * m


def _gcn_kernel_agg_first(x_ref, adj_ref, w_ref, b_ref, o_ref, acc_ref):
    """out = (adj @ x) @ W + b ; accumulate adj column-tiles on grid axis 2."""
    # x_ref:   (1, TK, Fin_p)   adj_ref: (TN, TK)
    # w_ref:   (Fin_p, Fout_p)  b_ref:   (1, Fout_p)
    # o_ref:   (1, TN, Fout_p)  acc_ref: (TN, Fin_p) f32 scratch
    k = pl.program_id(2)

    @pl.when(k == 0)
    def _():
        acc_ref[...] = jnp.zeros_like(acc_ref)

    # Aggregation over the narrow (padded) Fin width — the dominant matmul.
    acc_ref[...] += jnp.dot(adj_ref[...], x_ref[0],
                            preferred_element_type=jnp.float32)

    @pl.when(k == pl.num_programs(2) - 1)
    def _():
        out = jnp.dot(acc_ref[...], w_ref[...],
                      preferred_element_type=jnp.float32)
        o_ref[0] = (out + b_ref[...]).astype(o_ref.dtype)


def _gcn_kernel_proj_first(x_ref, adj_ref, w_ref, b_ref, o_ref, acc_ref):
    """out = adj @ (x @ W) + b ; accumulate adj column-tiles on grid axis 2."""
    # acc_ref: (TN, Fout_p) f32 scratch
    k = pl.program_id(2)

    @pl.when(k == 0)
    def _():
        acc_ref[...] = jnp.zeros_like(acc_ref)

    support = jnp.dot(x_ref[0], w_ref[...],
                      preferred_element_type=jnp.float32)      # (TK, Fout_p)
    acc_ref[...] += jnp.dot(adj_ref[...], support,
                            preferred_element_type=jnp.float32)

    @pl.when(k == pl.num_programs(2) - 1)
    def _():
        o_ref[0] = (acc_ref[...] + b_ref[...]).astype(o_ref.dtype)


def graph_convolution(x, adj, weight, bias=None, *, tile=256):
    """GCN forward.

    x: [B, N, Fin], adj: [N, N] (or [1, N, N]), weight: [Fin, Fout]
    (or [1, Fin, Fout]), bias: [1, Fout] or None.  Returns [B, N, Fout].
    """
    if adj.ndim == 3:
        adj = adj[0]
    if weight.ndim == 3:
        weight = weight[0]

    B, N, Fin = x.shape
    Fout = weight.shape[-1]
    if bias is None:
        bias = jnp.zeros((1, Fout), x.dtype)

    # Pad feature dims to the 128-lane width (lane-dense stores, full MXU
    # tiles); pad N to the row/col panel size.  Zero padding is exact: padded
    # adj cols / x rows / W rows contribute nothing, padded out rows/cols are
    # sliced away below.
    Fin_p = _round_up(Fin, 128)
    Fout_p = _round_up(Fout, 128)
    if N <= tile:
        N_p = _round_up(N, 8)
        TN = TK = N_p                      # single full-extent panel
    else:
        N_p = _round_up(N, tile)
        TN = TK = tile                     # 256: full MXU tile on v6e/v7x,
                                           # 2x128 on v5e, multiple of (8,128)

    x_p = jnp.pad(x, ((0, 0), (0, N_p - N), (0, Fin_p - Fin)))
    adj_p = jnp.pad(adj, ((0, N_p - N), (0, N_p - N)))
    w_p = jnp.pad(weight, ((0, Fin_p - Fin), (0, Fout_p - Fout)))
    b_p = jnp.pad(bias, ((0, 0), (0, Fout_p - Fout)))

    # Algebraic reorder: run the N x N aggregation over the narrower
    # (padded) feature width.
    agg_first = Fin_p <= Fout_p
    kernel = _gcn_kernel_agg_first if agg_first else _gcn_kernel_proj_first
    acc_cols = Fin_p if agg_first else Fout_p

    grid = (B, N_p // TN, N_p // TK)

    out_p = pl.pallas_call(
        kernel,
        out_shape=jax.ShapeDtypeStruct((B, N_p, Fout_p), x.dtype),
        grid_spec=pltpu.PrefetchScalarGridSpec(
            num_scalar_prefetch=0,
            grid=grid,
            in_specs=[
                pl.BlockSpec((1, TK, Fin_p), lambda b, i, k: (b, k, 0)),   # x
                pl.BlockSpec((TN, TK), lambda b, i, k: (i, k)),            # adj
                pl.BlockSpec((Fin_p, Fout_p), lambda b, i, k: (0, 0)),     # W
                pl.BlockSpec((1, Fout_p), lambda b, i, k: (0, 0)),         # b
            ],
            out_specs=pl.BlockSpec((1, TN, Fout_p), lambda b, i, k: (b, i, 0)),
            scratch_shapes=[pltpu.VMEM((TN, acc_cols), jnp.float32)],
        ),
        compiler_params=pltpu.CompilerParams(
            dimension_semantics=("parallel", "parallel", "arbitrary"),
        ),
    )(x_p, adj_p, w_p, b_p)

    return out_p[:, :N, :Fout]


if __name__ == "__main__":
    # Small shapes consistent with the module's forward.
    B, N = 2, 8          # batch, number of graph nodes
    in_features = 16
    out_features = 32

    key = jax.random.PRNGKey(0)
    kx, kadj, kw, kb = jax.random.split(key, 4)

    # Deterministic parameter init, mirroring reset_parameters():
    # stdv = 1/sqrt(in_features); uniform(-stdv, stdv)
    stdv = 1.0 / math.sqrt(in_features)
    weight = jax.random.uniform(
        kw, (in_features, out_features), jnp.float32, minval=-stdv, maxval=stdv)
    bias = jax.random.uniform(
        kb, (1, out_features), jnp.float32, minval=-stdv, maxval=stdv)

    x = jax.random.normal(kx, (B, N, in_features), jnp.float32)
    # Row-normalized random adjacency (shared across batch, as in the module).
    adj_raw = jax.random.uniform(kadj, (N, N), jnp.float32)
    adj = adj_raw / jnp.sum(adj_raw, axis=-1, keepdims=True)

    out = graph_convolution(x, adj, weight, bias)
    out = jax.block_until_ready(out)

    # Reference check in plain JAX.
    support_ref = jnp.einsum("bnf,fo->bno", x, weight)
    out_ref = jnp.einsum("nm,bmo->bno", adj, support_ref) + bias
    assert out.shape == (B, N, out_features)
    assert jnp.allclose(out, out_ref, atol=1e-5, rtol=1e-5)

    print("KERNEL_OK")
</pallas_src>

<mosaic_0001>
module attributes {stable_mosaic.version = 11 : i64} {
  func.func @_gcn_kernel_agg_first(%arg0: i32, %arg1: i32, %arg2: i32, %arg3: memref<1x8x128xf32, #tpu.memory_space<vmem>>, %arg4: memref<8x8xf32, #tpu.memory_space<vmem>>, %arg5: memref<128x128xf32, #tpu.memory_space<vmem>>, %arg6: memref<1x128xf32, #tpu.memory_space<vmem>>, %arg7: memref<1x8x128xf32, #tpu.memory_space<vmem>>, %arg8: memref<8x128xf32, #tpu.memory_space<vmem>>) attributes {dimension_semantics = [#tpu.dimension_semantics<parallel>, #tpu.dimension_semantics<parallel>, #tpu.dimension_semantics<arbitrary>], iteration_bounds = array<i64: 2, 1, 1>, scalar_prefetch = 0 : i64, scratch_operands = 1 : i64, tpu.core_type = #tpu.core_type<tc>, window_params = [{transform_indices = @transform_0, window_bounds = array<i64: 1, 8, 128>}, {transform_indices = @transform_1, window_bounds = array<i64: 8, 8>}, {pipeline_mode = #tpu.pipeline_mode<synchronous>, transform_indices = @transform_2, window_bounds = array<i64: 128, 128>}, {pipeline_mode = #tpu.pipeline_mode<synchronous>, transform_indices = @transform_3, window_bounds = array<i64: 1, 128>}, {transform_indices = @transform_4, window_bounds = array<i64: 1, 8, 128>}]} {
    %c0_i32 = arith.constant 0 : i32
    %0 = arith.cmpi eq, %arg2, %c0_i32 : i32
    %1 = arith.extui %0 : i1 to i32
    %c0_i32_0 = arith.constant 0 : i32
    %2 = arith.cmpi ne, %1, %c0_i32_0 : i32
    scf.if %2 {
      %cst_11 = arith.constant 0.000000e+00 : f32
      %13 = vector.broadcast %cst_11 : f32 to vector<8x128xf32>
      %c0_12 = arith.constant 0 : index
      %c0_13 = arith.constant 0 : index
      %14 = vector.load %arg8[%c0_12, %c0_13] : memref<8x128xf32, #tpu.memory_space<vmem>>, vector<8x128xf32>
      tpu.vector_store %arg8[%c0_12, %c0_13], %13 {strides = array<i32>} : memref<8x128xf32, #tpu.memory_space<vmem>>, vector<8x128xf32>,
    } else {
    }
    %c0 = arith.constant 0 : index
    %c0_1 = arith.constant 0 : index
    %3 = vector.load %arg8[%c0, %c0_1] : memref<8x128xf32, #tpu.memory_space<vmem>>, vector<8x128xf32>
    %c0_2 = arith.constant 0 : index
    %c0_3 = arith.constant 0 : index
    %4 = vector.load %arg4[%c0_2, %c0_3] : memref<8x8xf32, #tpu.memory_space<vmem>>, vector<8x8xf32>
    %c0_4 = arith.constant 0 : index
    %c0_5 = arith.constant 0 : index
    %c0_6 = arith.constant 0 : index
    %5 = vector.load %arg3[%c0_4, %c0_5, %c0_6] : memref<1x8x128xf32, #tpu.memory_space<vmem>>, vector<1x8x128xf32>
    %6 = vector.shape_cast %5 : vector<1x8x128xf32> to vector<8x128xf32>
    %cst = arith.constant dense<0.000000e+00> : vector<8x128xf32>
    %7 = tpu.matmul %4, %6, %cst {dimension_numbers = #tpu.dot_dimension_numbers<[1], [0], [0], [1], [0, 0, 1, 1], [], []>} : vector<8x8xf32>, vector<8x128xf32>, vector<8x128xf32> -> vector<8x128xf32>
    %8 = arith.addf %3, %7 : vector<8x128xf32>
    %c0_7 = arith.constant 0 : index
    %c0_8 = arith.constant 0 : index
    %9 = vector.load %arg8[%c0_7, %c0_8] : memref<8x128xf32, #tpu.memory_space<vmem>>, vector<8x128xf32>
    tpu.vector_store %arg8[%c0_7, %c0_8], %8 {strides = array<i32>} : memref<8x128xf32, #tpu.memory_space<vmem>>, vector<8x128xf32>,
    %c0_i32_9 = arith.constant 0 : i32
    %10 = arith.cmpi eq, %arg2, %c0_i32_9 : i32
    %11 = arith.extui %10 : i1 to i32
    %c0_i32_10 = arith.constant 0 : i32
    %12 = arith.cmpi ne, %11, %c0_i32_10 : i32
    scf.if %12 {
      %c0_11 = arith.constant 0 : index
      %c0_12 = arith.constant 0 : index
      %13 = vector.load %arg8[%c0_11, %c0_12] : memref<8x128xf32, #tpu.memory_space<vmem>>, vector<8x128xf32>
      %c0_13 = arith.constant 0 : index
      %c0_14 = arith.constant 0 : index
      %14 = vector.load %arg5[%c0_13, %c0_14] : memref<128x128xf32, #tpu.memory_space<vmem>>, vector<128x128xf32>
      %cst_15 = arith.constant dense<0.000000e+00> : vector<8x128xf32>
      %15 = tpu.matmul %13, %14, %cst_15 {dimension_numbers = #tpu.dot_dimension_numbers<[1], [0], [0], [1], [0, 0, 1, 1], [], []>} : vector<8x128xf32>, vector<128x128xf32>, vector<8x128xf32> -> vector<8x128xf32>
      %c0_16 = arith.constant 0 : index
      %c0_17 = arith.constant 0 : index
      %16 = vector.load %arg6[%c0_16, %c0_17] : memref<1x128xf32, #tpu.memory_space<vmem>>, vector<1x128xf32>
      %17 = vector.broadcast %16 : vector<1x128xf32> to vector<8x128xf32>
      %18 = arith.addf %15, %17 : vector<8x128xf32>
      %c0_18 = arith.constant 0 : index
      %c0_19 = arith.constant 0 : index
      %c0_20 = arith.constant 0 : index
      %19 = vector.load %arg7[%c0_18, %c0_19, %c0_20] : memref<1x8x128xf32, #tpu.memory_space<vmem>>, vector<1x8x128xf32>
      %20 = vector.shape_cast %19 : vector<1x8x128xf32> to vector<8x128xf32>
      %21 = vector.shape_cast %18 : vector<8x128xf32> to vector<1x8x128xf32>
      tpu.vector_store %arg7[%c0_18, %c0_19, %c0_20], %21 {strides = array<i32>} : memref<1x8x128xf32, #tpu.memory_space<vmem>>, vector<1x8x128xf32>,
    } else {
    }
    return
  }
  func.func @transform_0(%arg0: i32, %arg1: i32, %arg2: i32) -> (i32, i32, i32) {
    %c0_i32 = arith.constant 0 : i32
    %c0_i32_0 = arith.constant 0 : i32
    return %arg0, %arg2, %c0_i32 : i32, i32, i32
  }
  func.func @transform_1(%arg0: i32, %arg1: i32, %arg2: i32) -> (i32, i32) {
    %c0_i32 = arith.constant 0 : i32
    return %arg1, %arg2 : i32, i32
  }
  func.func @transform_2(%arg0: i32, %arg1: i32, %arg2: i32) -> (i32, i32) {
    %c0_i32 = arith.constant 0 : i32
    %c0_i32_0 = arith.constant 0 : i32
    %c0_i32_1 = arith.constant 0 : i32
    return %c0_i32, %c0_i32_0 : i32, i32
  }
  func.func @transform_3(%arg0: i32, %arg1: i32, %arg2: i32) -> (i32, i32) {
    %c0_i32 = arith.constant 0 : i32
    %c0_i32_0 = arith.constant 0 : i32
    %c0_i32_1 = arith.constant 0 : i32
    return %c0_i32, %c0_i32_0 : i32, i32
  }
  func.func @transform_4(%arg0: i32, %arg1: i32, %arg2: i32) -> (i32, i32, i32) {
    %c0_i32 = arith.constant 0 : i32
    %c0_i32_0 = arith.constant 0 : i32
    return %arg0, %arg1, %c0_i32 : i32, i32, i32
  }
}

</mosaic_0001>

<bundles_post_ra>
// kernel: tpu_custom_call.1
= control target key start
LH: loop header
LB: loop body
LE: loop exit
PB: predicated region body
PF: predicated region fallthrough
CT: control target
= control target key end

     0   :  { %9 = vsyncpa [#allocation4], 0  ;;  %s945_s0 = inlined_call_operand.hbm [shape: f32[2,8,128], index: 0, kind: input, shape index: {}]   ;;  %s946_s1 = inlined_call_operand.hbm [shape: f32[8,8], index: 1, kind: input, shape index: {}]   ;;  %s947_s2 = inlined_call_operand.hbm [shape: f32[128,128], index: 2, kind: input, shape index: {}]   ;;  %s948_s3 = inlined_call_operand.vmem [shape: f32[1,128], index: 3, kind: input, shape index: {}]   ;;  %s949_s4 = inlined_call_operand.hbm [shape: f32[2,8,128], index: 4, kind: output, shape index: {}]  }
   0x1   :  { %11 = vsyncpa [#allocation4 + $0x1], 0 }
   0x2   :  { %12 = vsyncpa [#allocation7], 0 }
   0x3   :  { %13 = vsyncpa [#allocation5], 0 }
   0x4   :  { %15 = vsyncpa [#allocation5 + $0x1], 0  ;;  %s792_s15 = smov 0   ;;  %s794_s16 = smov 0  }
   0x5   :  { %s796_s17 = smov 0   ;;  %s798_s18 = smov 0  }
   0x6   :  { %s800_s19 = smov 0   ;;  %s802_s20 = smov 0  }
   0x7 LB: > { %s481_s21 = sadd.s32 4294967295, %s761_s20   ;;  %s482_s22 = sadd.s32 4294967294, %s761_s20   ;;  %s761_s20 = sphi %s802_s20, %s21_s20   ;;  %s757_s19 = sphi %s800_s19, %s959_s19   ;;  %s753_s18 = sphi %s798_s18, %s958_s18   ;;  %s749_s17 = sphi %s796_s17, %s957_s17   ;;  %s745_s16 = sphi %s794_s16, %s956_s16   ;;  %s741_s15 = sphi %s792_s15, %s955_s15  }
   0x8   : > { %p62_p0 = scmp.ne.s32.totalorder %s745_s16, %s741_s15  ;;  %p828_p1 = scmp.eq.s32.totalorder %s481_s21, 0 }
   0x9   : > { %p164_p2 = scmp.eq.s32.totalorder %s482_s22, 1  ;;  %p483_p4 = scmp.ge.s32.totalorder %s761_s20, 1 }
   0xa   : > { %p834_p3 = por %p828_p1, %p62_p0  ;;  %p171_p6 = scmp.lt.s32.totalorder %s761_s20, 3 }
   0xb   : > { %p839_p5 = por %p164_p2, %p62_p0  ;;  %s186_s28 = sshll.u32 %s946_s1, 4  ;;  %s187_s28 = int_to_ptr.hbm [resolvable:$true] %s186_s28 }
   0xc   : > { %p847_p7 = pnand %p483_p4, %p171_p6  ;;  %p486_p8 = scmp.ge.s32.totalorder %s761_s20, 2 }
   0xd   : > { %s763_s30 = smov [#allocation6]   ;;  %s197_s8 = sshll.u32 %s947_s2, 4  ;;  %s198_s8 = int_to_ptr.hbm [resolvable:$true] %s197_s8 }
   0xe   : > { %p511_p9 = pneg %p847_p7  ;;  %s188_s5 = sshll.u32 %s763_s30, 4  ;;  %s189_s5 = int_to_ptr.vmem [resolvable:$true] %s188_s5 }
   0xf   : > { %s764_s9 = smov [#allocation8]   ;;  %s765_s11 = smov 128  }
  0x10   : > { %p512_p10 = pnand %p511_p9, %p828_p1  ;;  %s199_s10 = sshll.u32 %s764_s9, 4  ;;  %s200_s10 = int_to_ptr.vmem [resolvable:$true] %s199_s10 }
  0x11   : > { %s766_s12 = smov 8   ;;  %p158_p11 = scmp.eq.s32.totalorder %s481_s21, 1 }
  0x12   : > { %514 = dma.hbm_to_vmem [thread:$0]  (!%p512_p10), %s187_s28, 128, %s189_s5, [#allocation7]  }
  0x13   : > { %517 = dma.hbm_to_vmem [thread:$0]  (!%p512_p10), %s198_s8, 2048, %s200_s10, [#allocation7], %s765_s11, %s765_s11, %s766_s12  }
  0x14   : > { %s40_s13 = sadd.s32 1, %s757_s19  ;;  %s49_s14 = sadd.s32 1, %s749_s17 }
  0x15   : > { %p42_p12 = scmp.ge.s32.totalorder %s40_s13, 2  ;;  %p56_p13 = scmp.ne.s32.totalorder %s749_s17, %s745_s16 }
  0x16   : > { %p57_p0 = scmp.eq.s32.totalorder %s761_s20, 0  ;;  %p528_p4 = scmp.lt.s32.totalorder %s761_s20, 2 }
  0x17   : > { %s961_s13 = smov (%p42_p12, %s40_s13), 0  ;;  %p868_p2 = por %p158_p11, %p56_p13 }
  0x18   : > { %s44_s26 = ssub.s32 %s757_s19, %s961_s13  ;;  %s216_s27 = sand.u32 1, %s749_s17  }
  0x19   : > { %p47_p6 = scmp.eq.s32.totalorder %s44_s26, 0  ;;  %p58_p9 = por %p57_p0, %p56_p13 }
  0x1a   : > { %s487_s28 = sshll.u32 %s216_s27, 3  ;;  %s488_s21 = sshll.u32 %s757_s19, 3 }
  0x1b   : > { %s878_s30 = scalar_select %p47_p6, %s749_s17, %s49_s14  }
  0x1c   : > { %s225_s7 = scalar_lea.hbm %s945_s0, %s488_s21  ;;  %s220_s9 = scalar_lea.vmem [#allocation3], %s487_s28 }
  0x1d   : > { %s227_s8 = sshll.u32 %s225_s7, 4  ;;  %s229_s10 = sshll.u32 %s220_s9, 4  ;;  %s228_s8 = int_to_ptr.hbm [resolvable:$true] %s227_s8  ;;  %s230_s10 = int_to_ptr.vmem [resolvable:$true] %s229_s10 }
  0x1e   : > { %p519_p10 = pnand %p528_p4, %p58_p9  ;;  %s217_s11 = scalar_lea.sflag [#allocation4], %s216_s27 }
  0x1f   : > { %238 = sbr.rel (%p847_p7) target bundleno = 298 (0x12a), region = 36  ;;  %s888_s12 = sand.u32 (!%p847_p7), 1, %s745_s16  }
  0x20   : > { %521 = dma.hbm_to_vmem [thread:$0]  (!%p519_p10), %s228_s8, 128, %s230_s10, %s217_s11  }
  0x21   : > { %s490_s14 = sshll.u32 (!%p847_p7), %s888_s12, 3  ;;  %s241_s26 = scalar_lea.sflag (!%p847_p7), [#allocation4], %s888_s12 }
  0x22   : > { %s244_s28 = scalar_lea.vmem (!%p847_p7), [#allocation3], %s490_s14 }
  0x24   : > { %728 = dma.done.wait (%p834_p3), %s241_s26, 128  }
  0x25   : > { %730 = vsyncadd (%p834_p3), %s241_s26, 4294967168 }
  0x26   : > { %732 = dma.done.wait (%p828_p1), [#allocation7], 2176  }
  0x27   : > { %734 = vsyncadd (%p828_p1), [#allocation7], 4294965120  ;;  %vm288_vm0 = vcmask 64512   ;;  %v287_v0 = vld [vmem:[%s244_s28] sm:$0xff]  ;;  %v286_v1 = vld [vmem:[#allocation6] sm:$0xff]  ;;  %s496_s23 = sshll.u32 %s753_s18, 3 }
  0x28   : > { %v333_v2 = vld [vmem:[#allocation8 + $0x78] sm:$0xff]  ;;  %307 = vmatpush.msra.mxu0 %v287_v0  ;;  %v332_v3 = vld [vmem:[#allocation8 + $0x70] sm:$0xff]  ;;  %v331_v4 = vld [vmem:[#allocation8 + $0x68] sm:$0xff]  ;;  %s371_s27 = scalar_lea.hbm %s949_s4, %s496_s23  ;;  %s279_s6 = scalar_lea.vmem [#allocation9], %s490_s14 }
  0x29   : > { %338 = vmatpush.msra.mxu1 %v333_v2  ;;  %494 = vmatmul.msk.f32.vlgmr.msra.gmra.mxu0 %vm288_vm0, %v286_v1  ;;  %v330_v5 = vld [vmem:[#allocation8 + $0x60] sm:$0xff]  ;;  %v329_v6 = vld [vmem:[#allocation8 + $0x58] sm:$0xff]  ;;  %v328_v7 = vld [vmem:[#allocation8 + $0x50] sm:$0xff]  ;;  %s373_s7 = sshll.u32 %s279_s6, 4  ;;  %s375_s8 = sshll.u32 %s371_s27, 4  ;;  %s374_s7 = int_to_ptr.vmem [resolvable:$true] %s373_s7  ;;  %s376_s8 = int_to_ptr.hbm [resolvable:$true] %s375_s8 }
  0x2a   : > { %v327_v8 = vld [vmem:[#allocation8 + $0x48] sm:$0xff]  ;;  %v326_v9 = vld [vmem:[#allocation8 + $0x40] sm:$0xff]  ;;  %v325_v10 = vld [vmem:[#allocation8 + $0x38] sm:$0xff]  ;;  %s360_s9 = scalar_lea.sflag [#allocation5], %s888_s12  ;;  %s689_s18 = sshra.s32 %s376_s8, 4  ;;  %s690_s18 = int_to_ptr.hbm [resolvable:$true] %s689_s18 }
  0x2b   : > { %339 = vmatpush.msra.mxu1 %v332_v3  ;;  %v324_v11 = vld [vmem:[#allocation8 + $0x30] sm:$0xff]  ;;  %v323_v12 = vld [vmem:[#allocation8 + $0x28] sm:$0xff]  ;;  %v322_v13 = vld [vmem:[#allocation8 + $0x20] sm:$0xff]  ;;  %s691_s10 = scalar_lea.hbm %s690_s18, 8  ;;  %s695_s28 = scalar_lea.hbm %s949_s4, 16 }
  0x2c   : > { %v321_v14 = vld [vmem:[#allocation8 + $0x18] sm:$0xff]  ;;  %v320_v15 = vld [vmem:[#allocation8 + $0x10] sm:$0xff]  ;;  %v319_v16 = vld [vmem:[#allocation8 + $0x8] sm:$0xff]  ;;  %p692_p1 = scmp.ne.s32.totalorder %s690_s18, %s691_s10  ;;  %p696_p11 = scmp.lt.s32.totalorder %s690_s18, %s949_s4 }
  0x2d   : > { %340 = vmatpush.msra.mxu1 %v331_v4  ;;  %v318_v17 = vld [vmem:[#allocation8] sm:$0xff]  ;;  %v584_v19 = vld [vmem:[%s948_s3] ss:$0 sm:$0xff]  ;;  %p697_p12 = scmp.lt.s32.totalorder %s695_s28, %s691_s10 }
  0x2e   : > { %p693_p3 = pnand %p692_p1, %p868_p2 }
  0x2f   : > { %341 = vmatpush.msra.mxu1 %v330_v5  ;;  %p698_p13 = por %p697_p12, %p696_p11 }
  0x30   : > { %p694_p7 = pneg %p693_p3 }
  0x31   : > { %342 = vmatpush.msra.mxu1 %v329_v6 }
  0x32   : > { %p699_p0 = pnand %p698_p13, %p694_p7 }
  0x33   : > { %343 = vmatpush.msra.mxu1 %v328_v7 }
  0x35   : > { %344 = vmatpush.msra.mxu1 %v327_v8 }
  0x37   : > { %345 = vmatpush.msra.mxu1 %v326_v9 }
  0x39   : > { %346 = vmatpush.msra.mxu1 %v325_v10 }
  0x3b   : > { %347 = vmatpush.msra.mxu1 %v324_v11 }
  0x3d   : > { %348 = vmatpush.msra.mxu1 %v323_v12 }
  0x3f   : > { %349 = vmatpush.msra.mxu1 %v322_v13 }
  0x41   : > { %350 = vmatpush.msra.mxu1 %v321_v14 }
  0x43   : > { %351 = vmatpush.msra.mxu1 %v320_v15 }
  0x45   : > { %352 = vmatpush.msra.mxu1 %v319_v16 }
  0x47   : > { %353 = vmatpush.msra.mxu1 %v318_v17 }
  0xa6   : > { %v309_v18 = vpop.f32.mrf.mxu0 }
  0xa7   : > { %354 = vmatmul.f32.vlgmr.msra.gmra.mxu1 %v309_v18 }
 0x124   : > { %v355_v20 = vpop.f32.mrf.mxu1 }
 0x125   : > { %v356_v21 = vadd.f32 %v584_v19, %v355_v20 }
 0x127   : > { %358 = vst [vmem:[%s279_s6] sm:$0xff] %v356_v21 }
 0x128   : > { %702 = shalt.err (!%p699_p0)
}
 0x129   : > { %509 = dma.vmem_to_hbm [thread:$0]  (%p868_p2), %s374_s7, 128, %s376_s8, %s360_s9  }
 0x12a PF: > { %s387_s12 = sand.u32 1, %s741_s15   ;;  %p523_p4 = pnand %p486_p8, %p839_p5 }
 0x12b   : > { %s388_s24 = scalar_lea.sflag [#allocation5], %s387_s12 }
 0x12c   : > { %p524_p6 = pneg %p523_p4 }
 0x12e   : > { %736 = dma.done.wait (%p524_p6), %s388_s24, 128  }
 0x12f   : > { %738 = vsyncadd (%p524_p6), %s388_s24, 4294967168  ;;  %s21_s20 = sadd.s32 1, %s761_s20   ;;  %s955_s15 = smov %s745_s16 }
 0x130   : > { %p18_p9 = scmp.ge.s32.totalorder %s21_s20, 4   ;;  %s956_s16 = smov %s749_s17 }
 0x131   : > { %s957_s17 = smov %s878_s30  ;;  %s958_s18 = smov %s757_s19 }
 0x132   : > { %s959_s19 = smov %s961_s13  ;;  %20 = sbr.rel (!%p18_p9) target bundleno = 7 (0x7), region = 98 }
 0x137   :  { %394 = vsyncpa [#allocation4], 1 }
 0x138   :  { %396 = vsyncpa [#allocation4 + $0x1], 1 }
 0x139   :  { %397 = vsyncpa [#allocation7], 1 }
 0x13a   :  { %398 = vsyncpa [#allocation5], 1 }
 0x13b   :  { %400 = vsyncpa [#allocation5 + $0x1], 1 }

</bundles_post_ra>
